<compile_context>
chip_gen: v6e
topology: v6e:2x2x1
jax: 0.10.0
libtpu: 0.0.40
codegen_flags: <defaults>
</compile_context>

<pallas_src>
import jax
import jax.numpy as jnp
from jax.experimental import pallas as pl
from jax.experimental.pallas import tpu as pltpu


def cafs_kernel(xa_ref, xb_ref,
                w1a_ref, w1b_ref, bns_ref, bnb_ref,
                w2_ref, b2_ref, w3_ref, b3_ref,
                out_ref):
    # xa/xb blocks are (1, C, TN); drop the leading batch dim -> (C, TN).
    xa = xa_ref[0].astype(jnp.float32)          # (C, TN), pixels in lanes
    xb = xb_ref[0].astype(jnp.float32)          # (C, TN)

    # extract = Conv1x1(2C->C, no bias) + BN(folded) + ReLU
    # In torch-native weight orientation W[c_out, c_in]:
    #   h = W[:, :C] @ xa + W[:, C:] @ xb
    h = (jnp.dot(w1a_ref[...], xa, preferred_element_type=jnp.float32)
         + jnp.dot(w1b_ref[...], xb, preferred_element_type=jnp.float32))
    h = jnp.maximum(h * bns_ref[...] + bnb_ref[...], 0.0)      # (C, TN)

    # weight_conv = Conv1x1(C->2) ; softmax over the 2 channels.
    # 2-class softmax == sigmoid of the logit difference (one EUP op).
    logits = jnp.dot(w2_ref[...], h, preferred_element_type=jnp.float32) + b2_ref[...]
    wa = jax.nn.sigmoid(logits[0:1, :] - logits[1:2, :])        # (1, TN)
    wb = 1.0 - wa

    # selection + fusion
    fused = xa * wa + xb * wb                                   # (C, TN)

    # fuse_conv = Conv1x1(C->C) ; sigmoid gate ; residual enhancement
    wf = jax.nn.sigmoid(
        jnp.dot(w3_ref[...], fused, preferred_element_type=jnp.float32)
        + b3_ref[...])
    out = fused * (1.0 + wf)

    # Single lane-dense store of the whole (C, TN) block.
    out_ref[0] = out.astype(out_ref.dtype)


def make_cafs_params(channels, key):
    """Deterministic parameter init matching CAFS.__init__ shapes.

    Weights are kept in torch-native (c_out, c_in) orientation, which is
    exactly the matrix needed for the pixels-in-lanes layout (W @ x).
    """
    C = channels
    k1, k2, k3, k4, k5 = jax.random.split(key, 5)
    # extract conv: torch weight (C, 2C, 1, 1) -> (C, 2C)
    w1 = jax.random.normal(k1, (C, 2 * C), jnp.float32) * 0.1
    # BatchNorm2d(C), eval mode with deterministic (non-trivial) stats
    gamma = 1.0 + 0.01 * jnp.arange(C, dtype=jnp.float32)
    beta = 0.02 * jnp.arange(C, dtype=jnp.float32)
    run_mean = 0.05 * jnp.arange(C, dtype=jnp.float32)
    run_var = 1.0 + 0.1 * jnp.arange(C, dtype=jnp.float32)
    eps = 1e-5
    bn_scale = gamma / jnp.sqrt(run_var + eps)
    bn_bias = beta - run_mean * bn_scale
    # weight_conv: torch (2, C, 1, 1) -> (2, C), bias (2,)
    w2 = jax.random.normal(k2, (2, C), jnp.float32) * 0.1
    b2 = jax.random.normal(k3, (2,), jnp.float32) * 0.1
    # fuse_conv: torch (C, C, 1, 1) -> (C, C), bias (C,)
    w3 = jax.random.normal(k4, (C, C), jnp.float32) * 0.1
    b3 = jax.random.normal(k5, (C,), jnp.float32) * 0.1
    return dict(
        w1a=w1[:, :C], w1b=w1[:, C:],
        bn_scale=bn_scale.reshape(C, 1), bn_bias=bn_bias.reshape(C, 1),
        w2=w2, b2=b2.reshape(2, 1),
        w3=w3, b3=b3.reshape(C, 1),
    )


def _pick_tile_hw(hw, c, dtype_bytes, vmem_budget_bytes=12 * 1024 * 1024):
    """Largest lane tile that (a) divides H*W, (b) is a multiple of 128 or the
    full row, and (c) keeps 3 streams x 2 pipeline buffers under the budget."""
    cap = vmem_budget_bytes // (6 * c * dtype_bytes)
    cap = max(128, (cap // 128) * 128)
    if hw <= cap:
        return hw                      # full-row block (block dim == array dim)
    t = cap
    while t >= 128:
        if hw % t == 0:
            return t
        t -= 128
    raise ValueError("H*W must be a multiple of 128 when larger than the tile cap")


def cafs_forward(x_a, x_b, params):
    B, C, H, W = x_a.shape
    HW = H * W
    itemsize = jnp.dtype(x_a.dtype).itemsize
    tile_hw = _pick_tile_hw(HW, C, itemsize)

    # NCHW -> (B, C, H*W): a free reshape, no transpose / extra HBM traffic.
    xa3 = x_a.reshape(B, C, HW)
    xb3 = x_b.reshape(B, C, HW)

    io_spec = pl.BlockSpec((1, C, tile_hw), lambda b, j: (b, 0, j))
    full = lambda shape: pl.BlockSpec(shape, lambda b, j: (0,) * len(shape))

    out3 = pl.pallas_call(
        cafs_kernel,
        out_shape=jax.ShapeDtypeStruct((B, C, HW), x_a.dtype),
        grid_spec=pltpu.PrefetchScalarGridSpec(
            num_scalar_prefetch=0,
            grid=(B, HW // tile_hw),
            in_specs=[
                io_spec, io_spec,                    # x_a, x_b tiles
                full((C, C)), full((C, C)),          # w1a, w1b
                full((C, 1)), full((C, 1)),          # bn scale / bias
                full((2, C)), full((2, 1)),          # w2, b2
                full((C, C)), full((C, 1)),          # w3, b3
            ],
            out_specs=io_spec,
        ),
        compiler_params=pltpu.CompilerParams(
            dimension_semantics=("parallel", "parallel"),
            vmem_limit_bytes=32 * 1024 * 1024),
    )(xa3, xb3,
      params["w1a"], params["w1b"], params["bn_scale"], params["bn_bias"],
      params["w2"], params["b2"], params["w3"], params["b3"])

    # (B, C, H*W) -> NCHW (free reshape).
    return out3.reshape(B, C, H, W)


def cafs_reference(x_a, x_b, p):
    """Pure-JAX reference of the same forward pass (NCHW semantics)."""
    B, C, H, W = x_a.shape
    xa = x_a.reshape(B, C, H * W)
    xb = x_b.reshape(B, C, H * W)
    h = (jnp.einsum('oi,bin->bon', p["w1a"], xa)
         + jnp.einsum('oi,bin->bon', p["w1b"], xb))
    h = jnp.maximum(h * p["bn_scale"][None] + p["bn_bias"][None], 0.0)
    logits = jnp.einsum('oi,bin->bon', p["w2"], h) + p["b2"][None]
    w = jax.nn.softmax(logits, axis=1)
    fused = xa * w[:, 0:1] + xb * w[:, 1:2]
    wf = jax.nn.sigmoid(jnp.einsum('oi,bin->bon', p["w3"], fused) + p["b3"][None])
    out = fused + fused * wf
    return out.reshape(B, C, H, W)


if __name__ == "__main__":
    B, C, H, W = 2, 4, 16, 16
    key = jax.random.PRNGKey(0)
    kx, ky, kp = jax.random.split(key, 3)
    x_a = jax.random.normal(kx, (B, C, H, W), jnp.float32)
    x_b = jax.random.normal(ky, (B, C, H, W), jnp.float32)
    params = make_cafs_params(C, kp)

    out = cafs_forward(x_a, x_b, params)
    out = jax.block_until_ready(out)

    ref = cafs_reference(x_a, x_b, params)
    assert out.shape == (B, C, H, W)
    assert jnp.allclose(out, ref, atol=1e-5, rtol=1e-5), \
        float(jnp.max(jnp.abs(out - ref)))

    print("KERNEL_OK")
</pallas_src>

<mosaic_0001>
module attributes {stable_mosaic.version = 11 : i64} {
  func.func @cafs_kernel(%arg0: i32, %arg1: i32, %arg2: memref<1x4x256xf32, #tpu.memory_space<vmem>>, %arg3: memref<1x4x256xf32, #tpu.memory_space<vmem>>, %arg4: memref<4x4xf32, #tpu.memory_space<vmem>>, %arg5: memref<4x4xf32, #tpu.memory_space<vmem>>, %arg6: memref<4x1xf32, #tpu.memory_space<vmem>>, %arg7: memref<4x1xf32, #tpu.memory_space<vmem>>, %arg8: memref<2x4xf32, #tpu.memory_space<vmem>>, %arg9: memref<2x1xf32, #tpu.memory_space<vmem>>, %arg10: memref<4x4xf32, #tpu.memory_space<vmem>>, %arg11: memref<4x1xf32, #tpu.memory_space<vmem>>, %arg12: memref<1x4x256xf32, #tpu.memory_space<vmem>>) attributes {dimension_semantics = [#tpu.dimension_semantics<parallel>, #tpu.dimension_semantics<parallel>], iteration_bounds = array<i64: 2, 1>, scalar_prefetch = 0 : i64, scratch_operands = 0 : i64, tpu.core_type = #tpu.core_type<tc>, window_params = [{transform_indices = @transform_0, window_bounds = array<i64: 1, 4, 256>}, {transform_indices = @transform_1, window_bounds = array<i64: 1, 4, 256>}, {pipeline_mode = #tpu.pipeline_mode<synchronous>, transform_indices = @transform_2, window_bounds = array<i64: 4, 4>}, {pipeline_mode = #tpu.pipeline_mode<synchronous>, transform_indices = @transform_3, window_bounds = array<i64: 4, 4>}, {pipeline_mode = #tpu.pipeline_mode<synchronous>, transform_indices = @transform_4, window_bounds = array<i64: 4, 1>}, {pipeline_mode = #tpu.pipeline_mode<synchronous>, transform_indices = @transform_5, window_bounds = array<i64: 4, 1>}, {pipeline_mode = #tpu.pipeline_mode<synchronous>, transform_indices = @transform_6, window_bounds = array<i64: 2, 4>}, {pipeline_mode = #tpu.pipeline_mode<synchronous>, transform_indices = @transform_7, window_bounds = array<i64: 2, 1>}, {pipeline_mode = #tpu.pipeline_mode<synchronous>, transform_indices = @transform_8, window_bounds = array<i64: 4, 4>}, {pipeline_mode = #tpu.pipeline_mode<synchronous>, transform_indices = @transform_9, window_bounds = array<i64: 4, 1>}, {transform_indices = @transform_10, window_bounds = array<i64: 1, 4, 256>}]} {
    %c0 = arith.constant 0 : index
    %c0_0 = arith.constant 0 : index
    %c0_1 = arith.constant 0 : index
    %0 = vector.load %arg2[%c0, %c0_0, %c0_1] : memref<1x4x256xf32, #tpu.memory_space<vmem>>, vector<1x4x256xf32>
    %1 = vector.shape_cast %0 : vector<1x4x256xf32> to vector<4x256xf32>
    %c0_2 = arith.constant 0 : index
    %c0_3 = arith.constant 0 : index
    %c0_4 = arith.constant 0 : index
    %2 = vector.load %arg3[%c0_2, %c0_3, %c0_4] : memref<1x4x256xf32, #tpu.memory_space<vmem>>, vector<1x4x256xf32>
    %3 = vector.shape_cast %2 : vector<1x4x256xf32> to vector<4x256xf32>
    %c0_5 = arith.constant 0 : index
    %c0_6 = arith.constant 0 : index
    %4 = vector.load %arg4[%c0_5, %c0_6] : memref<4x4xf32, #tpu.memory_space<vmem>>, vector<4x4xf32>
    %cst = arith.constant dense<0.000000e+00> : vector<4x256xf32>
    %5 = tpu.matmul %4, %1, %cst {dimension_numbers = #tpu.dot_dimension_numbers<[1], [0], [0], [1], [0, 0, 1, 1], [], []>} : vector<4x4xf32>, vector<4x256xf32>, vector<4x256xf32> -> vector<4x256xf32>
    %c0_7 = arith.constant 0 : index
    %c0_8 = arith.constant 0 : index
    %6 = vector.load %arg5[%c0_7, %c0_8] : memref<4x4xf32, #tpu.memory_space<vmem>>, vector<4x4xf32>
    %cst_9 = arith.constant dense<0.000000e+00> : vector<4x256xf32>
    %7 = tpu.matmul %6, %3, %cst_9 {dimension_numbers = #tpu.dot_dimension_numbers<[1], [0], [0], [1], [0, 0, 1, 1], [], []>} : vector<4x4xf32>, vector<4x256xf32>, vector<4x256xf32> -> vector<4x256xf32>
    %8 = arith.addf %5, %7 : vector<4x256xf32>
    %c0_10 = arith.constant 0 : index
    %c0_11 = arith.constant 0 : index
    %9 = vector.load %arg6[%c0_10, %c0_11] : memref<4x1xf32, #tpu.memory_space<vmem>>, vector<4x1xf32>
    %10 = vector.broadcast %9 : vector<4x1xf32> to vector<4x256xf32>
    %11 = arith.mulf %8, %10 : vector<4x256xf32>
    %c0_12 = arith.constant 0 : index
    %c0_13 = arith.constant 0 : index
    %12 = vector.load %arg7[%c0_12, %c0_13] : memref<4x1xf32, #tpu.memory_space<vmem>>, vector<4x1xf32>
    %13 = vector.broadcast %12 : vector<4x1xf32> to vector<4x256xf32>
    %14 = arith.addf %11, %13 : vector<4x256xf32>
    %cst_14 = arith.constant 0.000000e+00 : f32
    %15 = vector.broadcast %cst_14 : f32 to vector<4x256xf32>
    %16 = arith.maximumf %14, %15 : vector<4x256xf32>
    %c0_15 = arith.constant 0 : index
    %c0_16 = arith.constant 0 : index
    %17 = vector.load %arg8[%c0_15, %c0_16] : memref<2x4xf32, #tpu.memory_space<vmem>>, vector<2x4xf32>
    %cst_17 = arith.constant dense<0.000000e+00> : vector<2x256xf32>
    %18 = tpu.matmul %17, %16, %cst_17 {dimension_numbers = #tpu.dot_dimension_numbers<[1], [0], [0], [1], [0, 0, 1, 1], [], []>} : vector<2x4xf32>, vector<4x256xf32>, vector<2x256xf32> -> vector<2x256xf32>
    %c0_18 = arith.constant 0 : index
    %c0_19 = arith.constant 0 : index
    %19 = vector.load %arg9[%c0_18, %c0_19] : memref<2x1xf32, #tpu.memory_space<vmem>>, vector<2x1xf32>
    %20 = vector.broadcast %19 : vector<2x1xf32> to vector<2x256xf32>
    %21 = arith.addf %18, %20 : vector<2x256xf32>
    %22 = vector.extract_strided_slice %21 {offsets = [0, 0], sizes = [1, 256], strides = [1, 1]} : vector<2x256xf32> to vector<1x256xf32>
    %23 = vector.extract_strided_slice %21 {offsets = [1, 0], sizes = [1, 256], strides = [1, 1]} : vector<2x256xf32> to vector<1x256xf32>
    %24 = arith.subf %22, %23 : vector<1x256xf32>
    %25 = arith.negf %24 : vector<1x256xf32>
    %26 = math.exp %25 : vector<1x256xf32>
    %cst_20 = arith.constant 1.000000e+00 : f32
    %27 = vector.broadcast %cst_20 : f32 to vector<1x256xf32>
    %28 = arith.addf %27, %26 : vector<1x256xf32>
    %29 = arith.divf %27, %28 : vector<1x256xf32>
    %cst_21 = arith.constant 1.000000e+00 : f32
    %30 = vector.broadcast %cst_21 : f32 to vector<1x256xf32>
    %31 = arith.subf %30, %29 : vector<1x256xf32>
    %32 = vector.broadcast %29 : vector<1x256xf32> to vector<4x256xf32>
    %33 = arith.mulf %1, %32 : vector<4x256xf32>
    %34 = vector.broadcast %31 : vector<1x256xf32> to vector<4x256xf32>
    %35 = arith.mulf %3, %34 : vector<4x256xf32>
    %36 = arith.addf %33, %35 : vector<4x256xf32>
    %c0_22 = arith.constant 0 : index
    %c0_23 = arith.constant 0 : index
    %37 = vector.load %arg10[%c0_22, %c0_23] : memref<4x4xf32, #tpu.memory_space<vmem>>, vector<4x4xf32>
    %cst_24 = arith.constant dense<0.000000e+00> : vector<4x256xf32>
    %38 = tpu.matmul %37, %36, %cst_24 {dimension_numbers = #tpu.dot_dimension_numbers<[1], [0], [0], [1], [0, 0, 1, 1], [], []>} : vector<4x4xf32>, vector<4x256xf32>, vector<4x256xf32> -> vector<4x256xf32>
    %c0_25 = arith.constant 0 : index
    %c0_26 = arith.constant 0 : index
    %39 = vector.load %arg11[%c0_25, %c0_26] : memref<4x1xf32, #tpu.memory_space<vmem>>, vector<4x1xf32>
    %40 = vector.broadcast %39 : vector<4x1xf32> to vector<4x256xf32>
    %41 = arith.addf %38, %40 : vector<4x256xf32>
    %42 = arith.negf %41 : vector<4x256xf32>
    %43 = math.exp %42 : vector<4x256xf32>
    %cst_27 = arith.constant 1.000000e+00 : f32
    %44 = vector.broadcast %cst_27 : f32 to vector<4x256xf32>
    %45 = arith.addf %44, %43 : vector<4x256xf32>
    %46 = arith.divf %44, %45 : vector<4x256xf32>
    %cst_28 = arith.constant 1.000000e+00 : f32
    %47 = vector.broadcast %cst_28 : f32 to vector<4x256xf32>
    %48 = arith.addf %47, %46 : vector<4x256xf32>
    %49 = arith.mulf %36, %48 : vector<4x256xf32>
    %c0_29 = arith.constant 0 : index
    %c0_30 = arith.constant 0 : index
    %c0_31 = arith.constant 0 : index
    %50 = vector.load %arg12[%c0_29, %c0_30, %c0_31] : memref<1x4x256xf32, #tpu.memory_space<vmem>>, vector<1x4x256xf32>
    %51 = vector.shape_cast %50 : vector<1x4x256xf32> to vector<4x256xf32>
    %52 = vector.shape_cast %49 : vector<4x256xf32> to vector<1x4x256xf32>
    tpu.vector_store %arg12[%c0_29, %c0_30, %c0_31], %52 {strides = array<i32>} : memref<1x4x256xf32, #tpu.memory_space<vmem>>, vector<1x4x256xf32>,
    return
  }
  func.func @transform_0(%arg0: i32, %arg1: i32) -> (i32, i32, i32) {
    %c0_i32 = arith.constant 0 : i32
    %c0_i32_0 = arith.constant 0 : i32
    return %arg0, %c0_i32, %arg1 : i32, i32, i32
  }
  func.func @transform_1(%arg0: i32, %arg1: i32) -> (i32, i32, i32) {
    %c0_i32 = arith.constant 0 : i32
    %c0_i32_0 = arith.constant 0 : i32
    return %arg0, %c0_i32, %arg1 : i32, i32, i32
  }
  func.func @transform_2(%arg0: i32, %arg1: i32) -> (i32, i32) {
    %c0_i32 = arith.constant 0 : i32
    %c0_i32_0 = arith.constant 0 : i32
    %c0_i32_1 = arith.constant 0 : i32
    return %c0_i32, %c0_i32_0 : i32, i32
  }
  func.func @transform_3(%arg0: i32, %arg1: i32) -> (i32, i32) {
    %c0_i32 = arith.constant 0 : i32
    %c0_i32_0 = arith.constant 0 : i32
    %c0_i32_1 = arith.constant 0 : i32
    return %c0_i32, %c0_i32_0 : i32, i32
  }
  func.func @transform_4(%arg0: i32, %arg1: i32) -> (i32, i32) {
    %c0_i32 = arith.constant 0 : i32
    %c0_i32_0 = arith.constant 0 : i32
    %c0_i32_1 = arith.constant 0 : i32
    return %c0_i32, %c0_i32_0 : i32, i32
  }
  func.func @transform_5(%arg0: i32, %arg1: i32) -> (i32, i32) {
    %c0_i32 = arith.constant 0 : i32
    %c0_i32_0 = arith.constant 0 : i32
    %c0_i32_1 = arith.constant 0 : i32
    return %c0_i32, %c0_i32_0 : i32, i32
  }
  func.func @transform_6(%arg0: i32, %arg1: i32) -> (i32, i32) {
    %c0_i32 = arith.constant 0 : i32
    %c0_i32_0 = arith.constant 0 : i32
    %c0_i32_1 = arith.constant 0 : i32
    return %c0_i32, %c0_i32_0 : i32, i32
  }
  func.func @transform_7(%arg0: i32, %arg1: i32) -> (i32, i32) {
    %c0_i32 = arith.constant 0 : i32
    %c0_i32_0 = arith.constant 0 : i32
    %c0_i32_1 = arith.constant 0 : i32
    return %c0_i32, %c0_i32_0 : i32, i32
  }
  func.func @transform_8(%arg0: i32, %arg1: i32) -> (i32, i32) {
    %c0_i32 = arith.constant 0 : i32
    %c0_i32_0 = arith.constant 0 : i32
    %c0_i32_1 = arith.constant 0 : i32
    return %c0_i32, %c0_i32_0 : i32, i32
  }
  func.func @transform_9(%arg0: i32, %arg1: i32) -> (i32, i32) {
    %c0_i32 = arith.constant 0 : i32
    %c0_i32_0 = arith.constant 0 : i32
    %c0_i32_1 = arith.constant 0 : i32
    return %c0_i32, %c0_i32_0 : i32, i32
  }
  func.func @transform_10(%arg0: i32, %arg1: i32) -> (i32, i32, i32) {
    %c0_i32 = arith.constant 0 : i32
    %c0_i32_0 = arith.constant 0 : i32
    return %arg0, %c0_i32, %arg1 : i32, i32, i32
  }
}

</mosaic_0001>

<bundles_post_ra>
// kernel: tpu_custom_call.1
= control target key start
LH: loop header
LB: loop body
LE: loop exit
PB: predicated region body
PF: predicated region fallthrough
CT: control target
= control target key end

     0   :  { %s1549_s0 = inlined_call_operand.vmem [shape: f32[2,4,256], index: 0, kind: input, shape index: {}]   ;;  %s1550_s1 = inlined_call_operand.hbm [shape: f32[2,4,256], index: 1, kind: input, shape index: {}]   ;;  %s1551_s2 = inlined_call_operand.vmem [shape: f32[4,4], index: 2, kind: input, shape index: {}]   ;;  %s1552_s3 = inlined_call_operand.hbm [shape: f32[4,4], index: 3, kind: input, shape index: {}]   ;;  %s1553_s4 = inlined_call_operand.vmem [shape: f32[4,1], index: 4, kind: input, shape index: {}]   ;;  %s1554_s5 = inlined_call_operand.vmem [shape: f32[4,1], index: 5, kind: input, shape index: {}]   ;;  %s1555_s6 = inlined_call_operand.vmem [shape: f32[2,4], index: 6, kind: input, shape index: {}]   ;;  %s1556_s7 = inlined_call_operand.vmem [shape: f32[2,1], index: 7, kind: input, shape index: {}]   ;;  %s1557_s8 = inlined_call_operand.vmem [shape: f32[4,4], index: 8, kind: input, shape index: {}]   ;;  %s1558_s9 = inlined_call_operand.vmem [shape: f32[4,1], index: 9, kind: input, shape index: {}]   ;;  %s1559_s10 = inlined_call_operand.hbm [shape: f32[2,4,256], index: 10, kind: output, shape index: {}]  }
   0x1   :  { %1566 = sst [smem:[#allocation15_spill]] %s1552_s3 }
   0x2   :  { %1567 = sst [smem:[#allocation16_spill]] %s1559_s10 }
   0x3   :  { %15 = vsyncpa [#allocation3], 0 }
   0x4   :  { %17 = vsyncpa [#allocation3 + $0x1], 0 }
   0x5   :  { %18 = vsyncpa [#allocation6], 0 }
   0x6   :  { %19 = vsyncpa [#allocation4], 0 }
   0x7   :  { %21 = vsyncpa [#allocation4 + $0x1], 0  ;;  %s1334_s13 = smov 0   ;;  %s1336_s14 = smov 0  }
   0x8   :  { %s1338_s15 = smov 0   ;;  %s1340_s16 = smov 0  }
   0x9   :  { %s1342_s17 = smov 0   ;;  %s1344_s18 = smov 0  }
   0xa LB: > { %1568 = sst [smem:[#allocation11_spill]] %s1252_s13  ;;  %s1001_s19 = sadd.s32 4294967295, %s1272_s18   ;;  %s1272_s18 = sphi %s1344_s18, %s27_s18   ;;  %s1268_s17 = sphi %s1342_s17, %s1588_s17   ;;  %s1264_s16 = sphi %s1340_s16, %s1587_s16   ;;  %s1260_s15 = sphi %s1338_s15, %s1591_s15   ;;  %s1256_s14 = sphi %s1336_s14, %s1590_s14   ;;  %s1252_s13 = sphi %s1334_s13, %s1589_s13  }
   0xb   : > { %1569 = sst [smem:[#allocation12_spill]] %s1268_s17  ;;  %s1002_s20 = sadd.s32 4294967294, %s1272_s18  }
   0xc   : > { %p89_p0 = scmp.ne.s32.totalorder %s1256_s14, %s1252_s13  ;;  %p1368_p1 = scmp.eq.s32.totalorder %s1001_s19, 0 }
   0xd   : > { %p1372_p2 = scmp.eq.s32.totalorder %s1001_s19, 1  ;;  %p289_p3 = scmp.eq.s32.totalorder %s1002_s20, 1 }
   0xe   : > { %p1378_p4 = por %p1368_p1, %p89_p0  ;;  %p1003_p5 = scmp.ge.s32.totalorder %s1272_s18, 1 }
   0xf   : > { %p1383_p6 = por %p289_p3, %p89_p0  ;;  %p296_p7 = scmp.lt.s32.totalorder %s1272_s18, 3 }
  0x10   : > { %s1572_s23 = scalar_select %p1378_p4, 1, 0 }
  0x11   : > { %s1573_s24 = scalar_select %p1383_p6, 1, 0 }
  0x12   : > { %p1388_p8 = pnand %p1003_p5, %p296_p7  ;;  %s1274_s26 = smov [#allocation5]  }
  0x13   : > { %1574 = sst [smem:[#allocation13_spill]] %s1573_s24  ;;  %s312_s27 = sshll.u32 %s1274_s26, 4  ;;  %s313_s27 = int_to_ptr.vmem [resolvable:$true] %s312_s27 }
  0x14   : > { %p1047_p10 = pneg %p1388_p8  ;;  %s39_s29 = sadd.s32 1, %s1268_s17 }
  0x15   : > { %s76_s30 = sadd.s32 1, %s1260_s15  ;;  %p41_p12 = scmp.ge.s32.totalorder %s39_s29, 2 }
  0x16   : > { %p1397_p11 = pnand %p1047_p10, %p1368_p1  ;;  %s1145_s11 = scalar_lea.vmem %s313_s27, 64 }
  0x17   : > { %p1146_p0 = scmp.ne.s32.totalorder %s313_s27, %s1145_s11  ;;  %p1153_p7 = scmp.lt.s32.totalorder %s313_s27, %s313_s27 }
  0x18   : > { %p1136_p13 = pneg %p1397_p11  ;;  %p1154_p6 = scmp.lt.s32.totalorder %s1145_s11, %s1145_s11 }
  0x1a   : > { %p1148_p3 = pnand %p1146_p0, %p1136_p13  ;;  %p1155_p9 = por %p1154_p6, %p1153_p7 }
  0x1c   : > { %p1149_p5 = pneg %p1148_p3 }
  0x1e   : > { %p1156_p4 = pnand %p1155_p9, %p1149_p5 }
  0x20   : > { %1159 = shalt.err (!%p1156_p4)
}
  0x21   : > { %s1577_s3 = sld [smem:[#allocation15_spill]]  ;;  %s1593_s29 = smov (%p41_p12, %s39_s29), 0 }
  0x22   : > { %1578 = sst [smem:[#allocation14_spill]] %s1593_s29  ;;  %p83_p6 = scmp.ne.s32.totalorder %s1260_s15, %s1256_s14 }
  0x23   : > { %p84_p4 = scmp.eq.s32.totalorder %s1272_s18, 0  ;;  %s71_s20 = ssub.s32 %s1268_s17, %s1593_s29 }
  0x24   : > { %p1060_p9 = scmp.lt.s32.totalorder %s1272_s18, 2  ;;  %p74_p10 = scmp.eq.s32.totalorder %s71_s20, 0 }
  0x25   : > { %p85_p13 = por %p84_p4, %p83_p6  ;;  %p1420_p0 = por %p1372_p2, %p83_p6 }
  0x26   : > { %s354_s28 = sand.u32 1, %s1260_s15   ;;  %s1036_s19 = sshll.u32 %s1268_s17, 7 }
  0x27   : > { %1050 = dma.hbm_to_vmem [thread:$0]  (!%p1397_p11), %s1577_s3, 64, %s313_s27, [#allocation6]  }
  0x28   : > { %s1426_s11 = scalar_select %p74_p10, %s1260_s15, %s76_s30  }
  0x29   : > { %s1006_s12 = sshll.u32 %s354_s28, 3  ;;  %s366_s24 = scalar_lea.hbm %s1550_s1, %s1036_s19 }
  0x2a   : > { %s358_s13 = scalar_lea.vmem [#allocation2], %s1006_s12  ;;  %p1432_p11 = pnand %p1060_p9, %p85_p13 }
  0x2b   : > { %s368_s10 = sshll.u32 %s358_s13, 4  ;;  %s355_s22 = scalar_lea.sflag [#allocation3], %s354_s28  ;;  %s369_s10 = int_to_ptr.vmem [resolvable:$true] %s368_s10 }
  0x2c   : > { %p1162_p2 = pneg %p1432_p11  ;;  %s1173_s29 = scalar_lea.vmem %s369_s10, 128 }
  0x2d   : > { %p1174_p12 = scmp.ne.s32.totalorder %s369_s10, %s1173_s29  ;;  %s1275_s30 = smov [#allocation2]  }
  0x2e   : > { %s1178_s17 = sshll.u32 %s1275_s30, 4  ;;  %s1179_s17 = int_to_ptr.vmem [resolvable:$false] %s1178_s17 }
  0x2f   : > { %p1176_p3 = pnand %p1174_p12, %p1162_p2  ;;  %s1180_s3 = scalar_lea.vmem %s1179_s17, 256 }
  0x30   : > { %p1181_p7 = scmp.lt.s32.totalorder %s369_s10, %s1179_s17  ;;  %p1182_p6 = scmp.lt.s32.totalorder %s1180_s3, %s1173_s29 }
  0x31   : > { %p1177_p5 = pneg %p1176_p3 }
  0x32   : > { %p1183_p4 = por %p1182_p6, %p1181_p7 }
  0x34   : > { %p1184_p10 = pnand %p1183_p4, %p1177_p5 }
  0x36   : > { %1187 = shalt.err (!%p1184_p10)
}
  0x37   : > { %1054 = dma.hbm_to_vmem [thread:$0]  (!%p1432_p11), %s366_s24, 128, %s369_s10, %s355_s22  }
  0x38   : > { %377 = sbr.rel (%p1388_p8) target bundleno = 775 (0x307), region = 60  ;;  %s1443_s13 = sand.u32 (!%p1388_p8), 1, %s1256_s14  }
  0x39   : > { %s1010_s28 = sshll.u32 (!%p1388_p8), %s1443_s13, 3  ;;  %s380_s12 = scalar_lea.sflag (!%p1388_p8), [#allocation3], %s1443_s13 }
  0x3a   : > { %s383_s17 = scalar_lea.vmem (!%p1388_p8), [#allocation2], %s1010_s28  ;;  %p1581_p9 = scmp.ne.s32.totalorder (!%p1388_p8), %s1572_s23, 0 }
  0x3d   : > { %1239 = dma.done.wait (%p1581_p9), %s380_s12, 128  }
  0x3e   : > { %1241 = vsyncadd (%p1581_p9), %s380_s12, 4294967168 }
  0x3f   : > { %1243 = dma.done.wait (%p1368_p1), [#allocation6], 64  }
  0x40   : > { %1245 = vsyncadd (%p1368_p1), [#allocation6], 4294967232  ;;  %p434_p8 = scmp.lt.s32.totalorder %s1264_s16, 1  ;;  %v1276_v0 = vmov 0.0   ;;  %v1277_v1 = vmov 0   ;;  %v1462_v2 = vld [vmem:[%s383_s17] sm:$0xff]  ;;  %v738_v42 = vlaneseq }
  0x41   : > { %524 = vmatprep.mubr.f32.mxu0 %v1276_v0  ;;  %604 = vmatprep.mubr.f32.mxu1 %v1276_v0  ;;  %vm455_vm0 = vcmask 1043456   ;;  %v450_v4 = vcombine.high %v1462_v2, %v1462_v2  ;;  %v611_v6 = vld [vmem:[%s1553_s4] sm:$0xf]  ;;  %v448_v7 = vld [vmem:[#allocation5] sm:$0xf]  ;;  %vm451_vm1 = vcmask 31744  }
  0x42   : > { %s435_s10 = scalar_select %p434_p8, %s1264_s16, 1  ;;  %1114 = vset.pattern.permute.xlu0 %v1277_v1  ;;  %1115 = vset.pattern.permute.xlu1 %v1277_v1  ;;  %v447_v8 = vld [vmem:[%s1551_s2] sm:$0xf]  ;;  %v739_v43 = vshrl.u32 %v738_v42, 7 }
  0x43   : > { %614 = vperm.xlu0 %1114, %v611_v6   ;;  %1015 = vmatprep.subr.msk.mxu0 %vm455_vm0, %v450_v4  ;;  %v619_v9 = vld [vmem:[%s1554_s5] sm:$0xf]  ;;  %s1038_s21 = sshll.u32 %s1264_s16, 7  ;;  %s432_s19 = scalar_lea.vmem [#allocation7], %s1010_s28 }
  0x44   : > { %s1037_s24 = sshll.u32 %s435_s10, 3  ;;  %1016 = vmatpush1.msk.msra.mxu0 %vm455_vm0, %v1462_v2  ;;  %v630_v10 = vld [vmem:[%s1556_s7] sm:$0x3]  ;;  %v740_v44 = vsub.s32 0, %v739_v43  ;;  %s889_s27 = sshll.u32 %s432_s19, 4  ;;  %s890_s27 = int_to_ptr.vmem [resolvable:$true] %s889_s27 }
  0x45   : > { %s441_s29 = scalar_lea.vmem %s1549_s0, %s1037_s24  ;;  %1017 = vmatmul.mubr.msk.f32.vlgmr.msra.gmra.mxu0 %vm451_vm1, %v448_v7  ;;  %633 = vperm.xlu1 %1115, %v630_v10   ;;  %v766_v11 = vld [vmem:[%s1558_s9] sm:$0xf]  ;;  %s1582_s30 = sld [smem:[#allocation16_spill]] }
  0x46   : > { %v1464_v3 = vld [vmem:[%s441_s29] sm:$0xff]  ;;  %709 = vmatprep.mubr.f32.mxu0 %v1276_v0  ;;  %s873_s12 = scalar_lea.sflag [#allocation4], %s1443_s13  ;;  %s1188_s17 = scalar_lea.vmem %s890_s27, 128 }
  0x47   : > { %v532_v5 = vcombine.high %v1464_v3, %v1464_v3  ;;  %622 = vperm.xlu0 %1114, %v619_v9   ;;  %v629_v26 = vld [vmem:[%s1555_s6] sm:$0x3]  ;;  %p1189_p1 = scmp.ne.s32.totalorder %s890_s27, %s1188_s17  ;;  %s1278_s10 = smov [#allocation7]  }
  0x48   : > { %v765_v59 = vld [vmem:[%s1557_s8] sm:$0xf]  ;;  %s1192_s24 = sshll.u32 %s1278_s10, 4  ;;  %s1193_s24 = int_to_ptr.vmem [resolvable:$false] %s1192_s24 }
  0x49   : > { %1018 = vmatprep.subr.msk.mxu1 %vm455_vm0, %v532_v5  ;;  %769 = vperm.xlu1 %1115, %v766_v11   ;;  %p1190_p13 = pnand %p1189_p1, %p1420_p0  ;;  %s1194_s16 = scalar_lea.vmem %s1193_s24, 256 }
  0x4a   : > { %1019 = vmatpush1.msk.msra.mxu1 %vm455_vm0, %v1464_v3  ;;  %p1195_p2 = scmp.lt.s32.totalorder %s890_s27, %s1193_s24  ;;  %p1196_p12 = scmp.lt.s32.totalorder %s1194_s16, %s1188_s17 }
  0x4b   : > { %1020 = vmatmul.mubr.msk.f32.vlgmr.msra.gmra.mxu1 %vm451_vm1, %v447_v8  ;;  %s887_s3 = scalar_lea.hbm %s1582_s30, %s1038_s21  ;;  %p1191_p11 = pneg %p1190_p13 }
  0x4c   : > { %845 = vmatprep.mubr.f32.mxu1 %v1276_v0  ;;  %p1197_p3 = por %p1196_p12, %p1195_p2 }
  0x4e   : > { %p1198_p5 = pnand %p1197_p3, %p1191_p11 }
  0xbe   : > { %v615_v12 = vpop.permute.xlu0 %614 }
  0xc0   : > { %v634_v27 = vpop.permute.xlu1 %633 }
  0xc2   : > { %v623_v20 = vpop.permute.xlu0 %622 }
  0xc4   : > { %v770_v60 = vpop.permute.xlu1 %769 }
 0x105   : > { %v526_v13 = vpop.f32.mrf.mxu0 }
 0x107   : > { %v528_v16 = vpop.f32.mrf.mxu0 }
 0x10b   : > { %v606_v14 = vpop.f32.mrf.mxu1 }
 0x10c   : > { %v607_v15 = vadd.f32 %v606_v14, %v526_v13 }
 0x10d   : > { %v608_v17 = vpop.f32.mrf.mxu1 }
 0x10e   : > { %v617_v18 = vmul.f32 %v615_v12, %v607_v15  ;;  %v609_v19 = vadd.f32 %v608_v17, %v528_v16 }
 0x110   : > { %v618_v21 = vmul.f32 %v615_v12, %v609_v19  ;;  %v625_v22 = vadd.f32 %v623_v20, %v617_v18 }
 0x112   : > { %v626_v23 = vadd.f32 %v623_v20, %v618_v21  ;;  %v627_v25 = vmax.f32 %v625_v22, 0.0 }
 0x114   : > { %v628_v24 = vmax.f32 %v626_v23, 0.0 }
 0x116   : > { %1021 = vmatprep.subr.msk.mxu0 %vm455_vm0, %v628_v24 }
 0x117   : > { %1022 = vmatpush1.msk.msra.mxu0 %vm455_vm0, %v627_v25 }
 0x118   : > { %1023 = vmatmul.mubr.msk.f32.vlgmr.msra.gmra.mxu0 %vm451_vm1, %v629_v26 }
 0x1d8   : > { %v711_v28 = vpop.f32.mrf.mxu0 }
 0x1d9   : > { %v712_v29 = vadd.f32 %v711_v28, %v634_v27 }
 0x1da   : > { %v713_v30 = vpop.f32.mrf.mxu0 }
 0x1db   : > { %v718_v31 = vrot.slane %v712_v29, 1  ;;  %v714_v32 = vadd.f32 %v713_v30, %v634_v27 }
 0x1dd   : > { %v722_v33 = vsub.f32 %v712_v29, %v718_v31  ;;  %v719_v34 = vrot.slane %v714_v32, 1 }
 0x1df   : > { %v1024_v35 = vmul.f32 -1.442695, %v722_v33  ;;  %v723_v36 = vsub.f32 %v714_v32, %v719_v34 }
 0x1e1   : > { %1118 = vpow2.f32 %v1024_v35  ;;  %v1025_v37 = vmul.f32 -1.442695, %v723_v36 }
 0x1e3   : > { %1120 = vpow2.f32 %v1025_v37 }
 0x1ee   : > { %v1119_v38 = vpop.eup %1118 }
 0x1ef   : > { %v730_v39 = vadd.f32 1.0, %v1119_v38 }
 0x1f0   : > { %v1121_v40 = vpop.eup %1120 }
 0x1f1   : > { %1122 = vrcp.f32 %v730_v39  ;;  %v731_v41 = vadd.f32 1.0, %v1121_v40 }
 0x1f3   : > { %1124 = vrcp.f32 %v731_v41 }
 0x1fe   : > { %v1123_v45 = vpop.eup %1122 }
 0x1ff   : > { %v736_v46 = vsub.f32 1.0, %v1123_v45  ;;  %v741_v49 = vrot.slane %v1123_v45, %v740_v44 }
 0x200   : > { %v1125_v47 = vpop.eup %1124 }
 0x201   : > { %v737_v48 = vsub.f32 1.0, %v1125_v47  ;;  %v745_v50 = vrot.slane %v1125_v47, %v740_v44  ;;  %v754_v52 = vrot.slane %v736_v46, %v740_v44 }
 0x203   : > { %v748_v51 = vcombine.low %v741_v49, %v745_v50  ;;  %v758_v53 = vrot.slane %v737_v48, %v740_v44 }
 0x205   : > { %v761_v54 = vcombine.low %v754_v52, %v758_v53  ;;  %v750_v55 = vmul.f32 %v748_v51, %v1464_v3 }
 0x207   : > { %v763_v56 = vmul.f32 %v761_v54, %v1462_v2 }
 0x209   : > { %v764_v57 = vadd.f32 %v763_v56, %v750_v55 }
 0x20b   : > { %v773_v58 = vcombine.high %v764_v57, %v764_v57 }
 0x20d   : > { %1026 = vmatprep.subr.msk.mxu1 %vm455_vm0, %v773_v58 }
 0x20e   : > { %1027 = vmatpush1.msk.msra.mxu1 %vm455_vm0, %v764_v57 }
 0x20f   : > { %1028 = vmatmul.mubr.msk.f32.vlgmr.msra.gmra.mxu1 %vm451_vm1, %v765_v59 }
 0x2cf   : > { %v847_v61 = vpop.f32.mrf.mxu1 }
 0x2d0   : > { %v848_v62 = vadd.f32 %v847_v61, %v770_v60 }
 0x2d1   : > { %v849_v63 = vpop.f32.mrf.mxu1 }
 0x2d2   : > { %v1029_v0 = vmul.f32 -1.442695, %v848_v62  ;;  %v850_v1 = vadd.f32 %v849_v63, %v770_v60 }
 0x2d4   : > { %1126 = vpow2.f32 %v1029_v0  ;;  %v1030_v2 = vmul.f32 -1.442695, %v850_v1 }
 0x2d6   : > { %1128 = vpow2.f32 %v1030_v2 }
 0x2e1   : > { %v1127_v3 = vpop.eup %1126 }
 0x2e2   : > { %v858_v4 = vadd.f32 1.0, %v1127_v3 }
 0x2e3   : > { %v1129_v5 = vpop.eup %1128 }
 0x2e4   : > { %1130 = vrcp.f32 %v858_v4  ;;  %v859_v6 = vadd.f32 1.0, %v1129_v5 }
 0x2e6   : > { %1132 = vrcp.f32 %v859_v6 }
 0x2f1   : > { %v1131_v7 = vpop.eup %1130 }
 0x2f2   : > { %v864_v9 = vadd.f32 1.0, %v1131_v7 }
 0x2f3   : > { %v1133_v8 = vpop.eup %1132 }
 0x2f4   : > { %v865_v10 = vadd.f32 1.0, %v1133_v8 }
 0x2f6   : > { %v868_v11 = vcombine.low %v864_v9, %v865_v10 }
 0x2f8   : > { %v870_v12 = vmul.f32 %v868_v11, %v764_v57 }
 0x2fa   : > { %871 = vst [vmem:[%s432_s19] sm:$0xff] %v870_v12 }
 0x2fb   : > { %1201 = shalt.err (!%p1198_p5)
}
 0x2fc   : > { %s1202_s28 = scalar_lea.hbm %s887_s3, 128  ;;  %s1206_s23 = scalar_lea.hbm %s1582_s30, 256 }
 0x2fd   : > { %p1203_p7 = scmp.ne.s32.totalorder %s887_s3, %s1202_s28  ;;  %p1207_p10 = scmp.lt.s32.totalorder %s887_s3, %s1582_s30 }
 0x2fe   : > { %p1208_p9 = scmp.lt.s32.totalorder %s1206_s23, %s1202_s28 }
 0x2ff   : > { %p1204_p6 = pnand %p1203_p7, %p1420_p0 }
 0x300   : > { %p1209_p8 = por %p1208_p9, %p1207_p10 }
 0x301   : > { %p1205_p4 = pneg %p1204_p6 }
 0x303   : > { %p1210_p1 = pnand %p1209_p8, %p1205_p4 }
 0x305   : > { %1213 = shalt.err (!%p1210_p1)
}
 0x306   : > { %1045 = dma.vmem_to_hbm [thread:$0]  (%p1420_p0), %s890_s27, 128, %s887_s3, %s873_s12  }
 0x307 PF: > { %s1583_s19 = sld [smem:[#allocation11_spill]]  ;;  %p1586_p11 = scmp.ge.s32.totalorder %s1272_s18, 2 }
 0x308   : > { %s1584_s20 = sld [smem:[#allocation13_spill]] }
 0x30d   : > { %s901_s22 = sand.u32 1, %s1583_s19  }
 0x30e   : > { %p1585_p13 = scmp.ne.s32.totalorder %s1584_s20, 0  ;;  %s902_s17 = scalar_lea.sflag [#allocation4], %s901_s22 }
 0x310   : > { %p1056_p2 = pnand %p1586_p11, %p1585_p13 }
 0x312   : > { %p1057_p12 = pneg %p1056_p2 }
 0x314   : > { %1247 = dma.done.wait (%p1057_p12), %s902_s17, 128  }
 0x315   : > { %1249 = vsyncadd (%p1057_p12), %s902_s17, 4294967168  ;;  %s27_s18 = sadd.s32 1, %s1272_s18   ;;  %s1587_s16 = sld [smem:[#allocation12_spill]] }
 0x316   : > { %p24_p3 = scmp.ge.s32.totalorder %s27_s18, 4   ;;  %s1588_s17 = sld [smem:[#allocation14_spill]] }
 0x317   : > { %s1589_s13 = smov %s1256_s14  ;;  %s1590_s14 = smov %s1260_s15 }
 0x318   : > { %s1591_s15 = smov %s1426_s11  ;;  %26 = sbr.rel (!%p24_p3) target bundleno = 10 (0xa), region = 112 }
 0x31d   :  { %907 = vsyncpa [#allocation3], 1 }
 0x31e   :  { %909 = vsyncpa [#allocation3 + $0x1], 1 }
 0x31f   :  { %910 = vsyncpa [#allocation6], 1 }
 0x320   :  { %911 = vsyncpa [#allocation4], 1 }
 0x321   :  { %913 = vsyncpa [#allocation4 + $0x1], 1 }

</bundles_post_ra>
